<compile_context>
chip_gen: v6e
topology: v6e:2x2x1
jax: 0.10.0
libtpu: 0.0.40
codegen_flags: <defaults>
</compile_context>

<pallas_src>
import jax
import jax.numpy as jnp
from jax.experimental import pallas as pl
from jax.experimental.pallas import tpu as pltpu

LANES = 128


def _round_up(n, m):
    return ((n + m - 1) // m) * m


def _add_bias_kernel(x_ref, b_ref, o_ref):
    # x_ref: (tr, 128); b_ref: (1, 128) resident bias -> broadcast VPU add.
    o_ref[...] = x_ref[...] + b_ref[...]


def something_model_forward(x, z, *, tr_max=8192, min_kernel_elems=256 * 1024):
    """forward(x) = x + [-1, 2] + z.   x: (..., 2) float, z: (2,) float."""
    if not jnp.issubdtype(x.dtype, jnp.floating):
        x = x.astype(jnp.float32)          # match torch int+float promotion
    y = jnp.array([-1.0, 2.0], dtype=jnp.float32)
    bias2 = (y + z.astype(jnp.float32)).astype(x.dtype)   # fold constants (2,)

    orig_shape = x.shape
    C = orig_shape[-1]
    assert C == 2, "trailing dim must be 2 to broadcast with y/z"
    total = x.size

    # Small or lane-ragged inputs: one fused XLA add is already at the HBM
    # roofline with zero launch / pipeline overhead -> skip pallas_call.
    if total == 0 or total < min_kernel_elems or total % LANES != 0:
        return x + bias2

    # ---- lane-dense kernel path (all reshapes are metadata ops) ----------
    itemsize = jnp.dtype(x.dtype).itemsize
    sub = max(8, 32 // itemsize)           # sublane tile: 8 (f32) / 16 (bf16)
    rows = total // LANES
    x_dense = x.reshape(rows, LANES)

    tr_cap = max(sub, (tr_max // sub) * sub)
    tr = min(tr_cap, _round_up(rows, sub))
    if tr >= rows and rows > sub:
        # keep >= 2 grid steps: megacore sharding + DMA/compute overlap
        tr = max(sub, _round_up(pl.cdiv(rows, 2), sub))
    grid = (pl.cdiv(rows, tr),)            # ragged last block handled by Pallas

    # Lane-dense bias row: the flattened x repeats columns [0,1,0,1,...] and
    # every 128-wide row starts at an even offset (128 % 2 == 0), so tiling
    # the 2-element bias across the 128 lanes matches the layout exactly.
    bias_row = jnp.tile(bias2, LANES // C).reshape(1, LANES)

    out_dense = pl.pallas_call(
        _add_bias_kernel,
        out_shape=jax.ShapeDtypeStruct((rows, LANES), x.dtype),
        grid=grid,
        in_specs=[
            pl.BlockSpec((tr, LANES), lambda i: (i, 0)),   # streamed x tiles
            pl.BlockSpec((1, LANES), lambda i: (0, 0)),    # resident bias
        ],
        out_specs=pl.BlockSpec((tr, LANES), lambda i: (i, 0)),
        compiler_params=pltpu.CompilerParams(
            dimension_semantics=("parallel",),
            vmem_limit_bytes=48 << 20,     # raise v5e's 16 MiB scoped default
        ),
    )(x_dense, bias_row)

    return out_dense.reshape(orig_shape)


if __name__ == "__main__":
    key = jax.random.PRNGKey(0)
    kx, kz, kx2 = jax.random.split(key, 3)

    # Deterministic stand-in for torch.randn(2) (torch draws from global RNG).
    # TODO(synk): torch re-draws z every forward; here z is an explicit input.
    z = jax.random.normal(kz, (2,), dtype=jnp.float32)
    y = jnp.array([-1.0, 2.0], dtype=jnp.float32)

    # Small shape consistent with the module (trailing dim must be 2).
    x = jax.random.normal(kx, (512, 2), dtype=jnp.float32)
    ref = x + y + z

    # 1) Force the Pallas kernel path even at this small demo shape.
    out = something_model_forward(x, z, min_kernel_elems=0)
    jax.block_until_ready(out)
    assert out.shape == ref.shape and out.dtype == ref.dtype
    assert jnp.allclose(out, ref, atol=1e-6), "kernel path mismatch"

    # 2) Default path: small inputs take the XLA bypass (same semantics).
    out2 = something_model_forward(x, z)
    jax.block_until_ready(out2)
    assert jnp.allclose(out2, ref, atol=1e-6), "bypass path mismatch"

    # 3) Lane-ragged total (100*2 % 128 != 0) exercises the ragged fallback.
    x3 = jax.random.normal(kx2, (100, 2), dtype=jnp.float32)
    out3 = something_model_forward(x3, z, min_kernel_elems=0)
    jax.block_until_ready(out3)
    assert jnp.allclose(out3, x3 + y + z, atol=1e-6), "ragged path mismatch"

    print("KERNEL_OK")
</pallas_src>

<mosaic_0001>
module attributes {stable_mosaic.version = 11 : i64} {
  func.func @_add_bias_kernel(%arg0: i32, %arg1: memref<8x128xf32, #tpu.memory_space<vmem>>, %arg2: memref<1x128xf32, #tpu.memory_space<vmem>>, %arg3: memref<8x128xf32, #tpu.memory_space<vmem>>) attributes {dimension_semantics = [#tpu.dimension_semantics<parallel>], iteration_bounds = array<i64: 1>, scalar_prefetch = 0 : i64, scratch_operands = 0 : i64, tpu.core_type = #tpu.core_type<tc>, window_params = [{transform_indices = @transform_0, window_bounds = array<i64: 8, 128>}, {pipeline_mode = #tpu.pipeline_mode<synchronous>, transform_indices = @transform_1, window_bounds = array<i64: 1, 128>}, {transform_indices = @transform_2, window_bounds = array<i64: 8, 128>}]} {
    %c0 = arith.constant 0 : index
    %c0_0 = arith.constant 0 : index
    %0 = vector.load %arg1[%c0, %c0_0] : memref<8x128xf32, #tpu.memory_space<vmem>>, vector<8x128xf32>
    %c0_1 = arith.constant 0 : index
    %c0_2 = arith.constant 0 : index
    %1 = vector.load %arg2[%c0_1, %c0_2] : memref<1x128xf32, #tpu.memory_space<vmem>>, vector<1x128xf32>
    %2 = vector.broadcast %1 : vector<1x128xf32> to vector<8x128xf32>
    %3 = arith.addf %0, %2 : vector<8x128xf32>
    %c0_3 = arith.constant 0 : index
    %c0_4 = arith.constant 0 : index
    %4 = vector.load %arg3[%c0_3, %c0_4] : memref<8x128xf32, #tpu.memory_space<vmem>>, vector<8x128xf32>
    tpu.vector_store %arg3[%c0_3, %c0_4], %3 {strides = array<i32>} : memref<8x128xf32, #tpu.memory_space<vmem>>, vector<8x128xf32>,
    return
  }
  func.func @transform_0(%arg0: i32) -> (i32, i32) {
    %c0_i32 = arith.constant 0 : i32
    %c0_i32_0 = arith.constant 0 : i32
    return %arg0, %c0_i32 : i32, i32
  }
  func.func @transform_1(%arg0: i32) -> (i32, i32) {
    %c0_i32 = arith.constant 0 : i32
    %c0_i32_0 = arith.constant 0 : i32
    %c0_i32_1 = arith.constant 0 : i32
    return %c0_i32, %c0_i32_0 : i32, i32
  }
  func.func @transform_2(%arg0: i32) -> (i32, i32) {
    %c0_i32 = arith.constant 0 : i32
    %c0_i32_0 = arith.constant 0 : i32
    return %arg0, %c0_i32 : i32, i32
  }
}

</mosaic_0001>

<bundles_post_ra>
// kernel: tpu_custom_call.1
= control target key start
LH: loop header
LB: loop body
LE: loop exit
PB: predicated region body
PF: predicated region fallthrough
CT: control target
= control target key end

     0   :  { %7 = vsyncpa [#allocation3], 0  ;;  %s122_s0 = inlined_call_operand.hbm [shape: f32[8,128], index: 0, kind: input, shape index: {}]   ;;  %s123_s1 = inlined_call_operand.vmem [shape: f32[1,128], index: 1, kind: input, shape index: {}]   ;;  %s124_s2 = inlined_call_operand.hbm [shape: f32[8,128], index: 2, kind: output, shape index: {}]  }
   0x1   :  { %8 = vsyncpa [#allocation4], 0  ;;  %s96_s9 = smov [#allocation2]  }
   0x2   :  { %s15_s10 = sshll.u32 %s96_s9, 4  ;;  %s16_s10 = int_to_ptr.vmem [resolvable:$true] %s15_s10 }
   0x3   :  { %s60_s11 = scalar_lea.vmem %s16_s10, 128  ;;  %p65_p1 = scmp.lt.s32.totalorder %s16_s10, %s16_s10 }
   0x4   :  { %p61_p0 = scmp.ne.s32.totalorder %s16_s10, %s60_s11  ;;  %p66_p2 = scmp.lt.s32.totalorder %s60_s11, %s60_s11 }
   0x6   :  { %p67_p3 = por %p66_p2, %p65_p1 }
   0x8   :  { %p68_p4 = pnand %p67_p3, %p61_p0 }
   0xa   :  { %71 = shalt.err (!%p68_p4)
}
   0xb   :  { %18 = dma.hbm_to_vmem [thread:$0]  %s122_s0, 128, %s16_s10, [#allocation3]  }
   0xc   :  { %92 = dma.done.wait [#allocation3], 128  }
   0xd   :  { %93 = vsyncadd [#allocation3], 4294967168  ;;  %s97_s14 = smov [#allocation5]   ;;  %v24_v0 = vld [vmem:[#allocation2] sm:$0xff] }
   0xe   :  { %s40_s15 = sshll.u32 %s97_s14, 4  ;;  %v49_v1 = vld [vmem:[%s123_s1] ss:$0 sm:$0xff]  ;;  %s41_s15 = int_to_ptr.vmem [resolvable:$true] %s40_s15 }
   0xf   :  { %v32_v2 = vadd.f32 %v49_v1, %v24_v0  ;;  %s72_s18 = scalar_lea.vmem %s41_s15, 128  ;;  %p77_p6 = scmp.lt.s32.totalorder %s41_s15, %s41_s15 }
  0x10   :  { %p73_p5 = scmp.ne.s32.totalorder %s41_s15, %s72_s18  ;;  %p78_p7 = scmp.lt.s32.totalorder %s72_s18, %s72_s18 }
  0x11   :  { %33 = vst [vmem:[#allocation5] sm:$0xff] %v32_v2 }
  0x12   :  { %p79_p8 = por %p78_p7, %p77_p6 }
  0x14   :  { %p80_p9 = pnand %p79_p8, %p73_p5 }
  0x16   :  { %83 = shalt.err (!%p80_p9)
}
  0x17   :  { %43 = dma.vmem_to_hbm [thread:$0]  %s41_s15, 128, %s124_s2, [#allocation4]  }
  0x18   :  { %94 = dma.done.wait [#allocation4], 128  }
  0x19   :  { %95 = vsyncadd [#allocation4], 4294967168 }
  0x1a   :  { %47 = vsyncpa [#allocation3], 1 }
  0x1b   :  { %48 = vsyncpa [#allocation4], 1 }

</bundles_post_ra>
